<compile_context>
chip_gen: v7x
topology: tpu7x:2x2x1
jax: 0.10.0
libtpu: 0.0.40
codegen_flags: <defaults>
</compile_context>

<pallas_src>
import jax
import jax.numpy as jnp
from jax.experimental import pallas as pl
from jax.experimental.pallas import tpu as pltpu

_LANE = 128
# ~2 MiB per buffer: with double-buffered input + output that is 8 MiB total,
# safely under v5e's 16 MiB default scoped VMEM, v6e's 32 MiB scoped, and
# v7x's 64 MiB physical VMEM.
_TARGET_BLOCK_BYTES = 2 * 1024 * 1024


def _copy_kernel(x_ref, o_ref):
    # Pure pass-through on one lane-dense tile (full-width unmasked vst).
    o_ref[...] = x_ref[...]


def _sublane_multiple(itemsize: int) -> int:
    # Sub-32-bit dtypes pack along sublanes: 8 rows for 4-byte, 16 for 2-byte,
    # 32 for 1-byte elements keep vector loads/stores full-width.
    return max(8, 8 * (4 // max(1, itemsize)))


def _pallas_copy_2d(x2d: jax.Array, block_rows: int) -> jax.Array:
    rows, lane = x2d.shape
    grid = (pl.cdiv(rows, block_rows),)
    bytes_moved = 2 * rows * lane * x2d.dtype.itemsize  # one read + one write
    return pl.pallas_call(
        _copy_kernel,
        out_shape=jax.ShapeDtypeStruct((rows, lane), x2d.dtype),
        grid=grid,
        in_specs=[pl.BlockSpec((block_rows, lane), lambda i: (i, 0))],
        out_specs=pl.BlockSpec((block_rows, lane), lambda i: (i, 0)),
        compiler_params=pltpu.CompilerParams(
            dimension_semantics=("parallel",),
        ),
        cost_estimate=pl.CostEstimate(
            flops=0, transcendentals=0, bytes_accessed=bytes_moved
        ),
    )(x2d)


def _materialized_identity(x: jax.Array) -> jax.Array:
    """Optimized Pallas identity copy (only used when a new buffer is required)."""
    n = x.size
    itemsize = x.dtype.itemsize
    flat = x.reshape(-1)

    if n % _LANE == 0:
        # Common case: no wrapper-side pad and no trailing slice ->
        # the minimum 1 HBM read + 1 HBM write.
        lane = _LANE
        for q in (8, 4, 2):  # widen lanes when possible: fewer, larger DMA rows
            if n % (_LANE * q) == 0:
                lane = _LANE * q
                break
        rows = n // lane
        x2d = flat.reshape(rows, lane)

        slab_bytes = n * itemsize
        if slab_bytes <= _TARGET_BLOCK_BYTES:
            # Small-input fast path: single full-array block (block shape equals
            # the full array dims, so it is exempt from (8,128) divisibility).
            y2d = _pallas_copy_2d(x2d, rows)
        else:
            pack = _sublane_multiple(itemsize)
            block_rows = (_TARGET_BLOCK_BYTES // (lane * itemsize)) // pack * pack
            block_rows = max(pack, min(block_rows, rows))
            # slab > target guarantees grid >= 2 steps (good for v7x megacore).
            y2d = _pallas_copy_2d(x2d, block_rows)
        return y2d.reshape(x.shape)

    # Ragged tail: pad to a lane-dense slab, copy, slice back (rare path).
    pack = _sublane_multiple(itemsize)
    rows = -(-n // _LANE)                       # ceil(n / 128)
    rows_padded = -(-rows // pack) * pack       # round rows up to sublane pack
    flat = jnp.pad(flat, (0, rows_padded * _LANE - n))
    x2d = flat.reshape(rows_padded, _LANE)

    slab_bytes = rows_padded * _LANE * itemsize
    if slab_bytes <= _TARGET_BLOCK_BYTES:
        block_rows = rows_padded                # single full-array block
    else:
        block_rows = (_TARGET_BLOCK_BYTES // (_LANE * itemsize)) // pack * pack
        block_rows = max(pack, min(block_rows, rows_padded))
    y2d = _pallas_copy_2d(x2d, block_rows)
    return y2d.reshape(-1)[:n].reshape(x.shape)


def my_module_forward(x: jax.Array, materialize: bool = False) -> jax.Array:
    """Pallas equivalent of MyModule.forward.

    The PyTorch forward body is `pass` (no ops), so the default path does
    zero work and returns the input as-is — no HBM read/write, no launch.
    Set materialize=True to force a fresh buffer via the tiled Pallas copy.
    """
    if not materialize:
        return x
    return _materialized_identity(x)


if __name__ == "__main__":
    key = jax.random.PRNGKey(0)
    # Small NCHW input consistent with a typical conv-style module signature.
    x = jax.random.normal(key, (2, 4, 16, 16), dtype=jnp.float32)

    # Faithful / fast path: no kernel, no copy.
    y0 = my_module_forward(x)
    assert y0 is x

    # Pallas path: lane-dense identity copy (single full-array block here,
    # since the 8 KiB slab is far below the 2 MiB tile target).
    y1 = my_module_forward(x, materialize=True)
    y1 = jax.block_until_ready(y1)

    assert y1.shape == x.shape and y1.dtype == x.dtype
    assert bool(jnp.array_equal(y1, x))

    print("KERNEL_OK")
</pallas_src>

<mosaic_0001>
module attributes {stable_mosaic.version = 11 : i64} {
  func.func @_copy_kernel(%arg0: i32, %arg1: memref<2x1024xf32, #tpu.memory_space<vmem>>, %arg2: memref<2x1024xf32, #tpu.memory_space<vmem>>) attributes {dimension_semantics = [#tpu.dimension_semantics<parallel>], iteration_bounds = array<i64: 1>, scalar_prefetch = 0 : i64, scratch_operands = 0 : i64, tpu.core_type = #tpu.core_type<tc>, window_params = [{transform_indices = @transform_0, window_bounds = array<i64: 2, 1024>}, {transform_indices = @transform_1, window_bounds = array<i64: 2, 1024>}]} {
    %c0 = arith.constant 0 : index
    %c0_0 = arith.constant 0 : index
    %0 = vector.load %arg1[%c0, %c0_0] : memref<2x1024xf32, #tpu.memory_space<vmem>>, vector<2x1024xf32>
    %c0_1 = arith.constant 0 : index
    %c0_2 = arith.constant 0 : index
    %1 = vector.load %arg2[%c0_1, %c0_2] : memref<2x1024xf32, #tpu.memory_space<vmem>>, vector<2x1024xf32>
    tpu.vector_store %arg2[%c0_1, %c0_2], %0 {strides = array<i32>} : memref<2x1024xf32, #tpu.memory_space<vmem>>, vector<2x1024xf32>,
    return
  }
  func.func @transform_0(%arg0: i32) -> (i32, i32) {
    %c0_i32 = arith.constant 0 : i32
    %c0_i32_0 = arith.constant 0 : i32
    return %arg0, %c0_i32 : i32, i32
  }
  func.func @transform_1(%arg0: i32) -> (i32, i32) {
    %c0_i32 = arith.constant 0 : i32
    %c0_i32_0 = arith.constant 0 : i32
    return %arg0, %c0_i32 : i32, i32
  }
}

</mosaic_0001>

<bundles_post_ra>
// kernel: tpu_custom_call.1
= control target key start
LH: loop header
LB: loop body
LE: loop exit
PB: predicated region body
PF: predicated region fallthrough
CT: control target
= control target key end

     0   :  { %6 = vsyncpa [#allocation3], 0  ;;  %s126_s0 = inlined_call_operand.hbm [shape: f32[2,1024], index: 0, kind: input, shape index: {}]   ;;  %s127_s1 = inlined_call_operand.hbm [shape: f32[2,1024], index: 1, kind: output, shape index: {}]  }
   0x1   :  { %7 = vsyncpa [#allocation4], 0  ;;  %s90_s6 = smov [#allocation2]   ;;  %s42_s10 = scalar_lea.hbm %s126_s0, 256 }
   0x2   :  { %s14_s7 = sshll.u32 %s90_s6, 4  ;;  %p43_p0 = scmp.ne.s32.totalorder %s126_s0, %s42_s10  ;;  %s15_s7 = int_to_ptr.vmem [resolvable:$true] %s14_s7 }
   0x3   :  { %p46_p1 = scmp.lt.u32.totalorder %s42_s10, %s126_s0 }
   0x5   :  { %p48_p2 = pnand %p46_p1, %p43_p0 }
   0x7   :  { %51 = shalt.err (!%p48_p2)
}
   0x8   :  { %s52_s15 = scalar_lea.vmem %s15_s7, 256  ;;  %p57_p4 = scmp.lt.s32.totalorder %s15_s7, %s15_s7 }
   0x9   :  { %p53_p3 = scmp.ne.s32.totalorder %s15_s7, %s52_s15  ;;  %p58_p5 = scmp.lt.s32.totalorder %s52_s15, %s52_s15 }
   0xb   :  { %p59_p6 = por %p58_p5, %p57_p4 }
   0xd   :  { %p60_p7 = pnand %p59_p6, %p53_p3 }
   0xf   :  { %63 = shalt.err (!%p60_p7)
}
  0x10   :  { %17 = dma.hbm_to_vmem [thread:$0]  %s126_s0, 256, %s15_s7, [#allocation3]  }
  0x11   :  { %86 = dma.done.wait [#allocation3], 256  }
  0x12   :  { %87 = vsyncadd [#allocation3], 4294967040  ;;  %s91_s18 = smov [#allocation5]   ;;  %v21_v0 = vld [vmem:[#allocation2] sm:$0xff]  ;;  %v22_v1 = vld [vmem:[#allocation2 + $0x8] sm:$0xff] }
  0x13   :  { %s31_s19 = sshll.u32 %s91_s18, 4  ;;  %23 = vst [vmem:[#allocation5] sm:$0xff] %v21_v0  ;;  %24 = vst [vmem:[#allocation5 + $0x8] sm:$0xff] %v22_v1  ;;  %s32_s19 = int_to_ptr.vmem [resolvable:$true] %s31_s19 }
  0x14   :  { %s64_s20 = scalar_lea.vmem %s32_s19, 256  ;;  %p69_p9 = scmp.lt.s32.totalorder %s32_s19, %s32_s19 }
  0x15   :  { %p65_p8 = scmp.ne.s32.totalorder %s32_s19, %s64_s20  ;;  %p70_p10 = scmp.lt.s32.totalorder %s64_s20, %s64_s20 }
  0x17   :  { %p71_p11 = por %p70_p10, %p69_p9 }
  0x19   :  { %p72_p12 = pnand %p71_p11, %p65_p8 }
  0x1b   :  { %75 = shalt.err (!%p72_p12)
}
  0x1c   :  { %s76_s0 = scalar_lea.hbm %s127_s1, 256 }
  0x1d   :  { %p77_p13 = scmp.ne.s32.totalorder %s127_s1, %s76_s0  ;;  %p80_p0 = scmp.lt.u32.totalorder %s76_s0, %s127_s1 }
  0x1f   :  { %p82_p1 = pnand %p80_p0, %p77_p13 }
  0x21   :  { %85 = shalt.err (!%p82_p1)
}
  0x22   :  { %34 = dma.vmem_to_hbm [thread:$0]  %s32_s19, 256, %s127_s1, [#allocation4]  }
  0x23   :  { %88 = dma.done.wait [#allocation4], 256  }
  0x24   :  { %89 = vsyncadd [#allocation4], 4294967040 }
  0x25   :  { %38 = vsyncpa [#allocation3], 1 }
  0x26   :  { %39 = vsyncpa [#allocation4], 1 }

</bundles_post_ra>
